<compile_context>
chip_gen: v6e
topology: v6e:2x2x1
jax: 0.10.0
libtpu: 0.0.40
codegen_flags: <defaults>
</compile_context>

<pallas_src>
import math

import jax
import jax.numpy as jnp
from jax.experimental import pallas as pl
from jax.experimental.pallas import tpu as pltpu


def _conv1d_relu_kernel(x_ref, w_ref, b_ref, out_ref):
    """One batch element per grid step.

    x_ref:   (1, S+2, C_in)   zero-padded sequence for this batch element
    w_ref:   (3, C_in, C_out) conv taps, pre-transposed to (k, in, out)
    b_ref:   (1, C_out)       bias
    out_ref: (1, S, C_out)
    """
    S = out_ref.shape[1]
    x = x_ref[0]                                            # (S+2, C_in)

    # Conv1d(kernel=3, padding=1) == sum of three shifted matmuls (f32 accumulate).
    acc = jnp.dot(x[0:S, :], w_ref[0], preferred_element_type=jnp.float32)
    acc = acc + jnp.dot(x[1:S + 1, :], w_ref[1], preferred_element_type=jnp.float32)
    acc = acc + jnp.dot(x[2:S + 2, :], w_ref[2], preferred_element_type=jnp.float32)
    acc = acc + b_ref[...]                                  # (1, C_out) broadcast

    # Fused ReLU + single lane-dense store of the whole (S, C_out) slab.
    out_ref[0] = jnp.maximum(acc, 0.0).astype(out_ref.dtype)


def cnn_layer_forward(x, weight, bias):
    """CNNLayer forward.

    x:      [B, S, C_in]       (module permutes internally; we stay channel-last)
    weight: [C_out, C_in, 3]   torch Conv1d weight layout
    bias:   [C_out]
    returns [B, S, C_out]
    """
    B, S, C_in = x.shape
    C_out = weight.shape[0]

    # padding=1 on both ends of the sequence dim, done once outside the kernel.
    x_pad = jnp.pad(x, ((0, 0), (1, 1), (0, 0)))

    # (C_out, C_in, K) -> (K, C_in, C_out): each tap is a lane-dense [C_in, C_out] slab.
    w_taps = jnp.transpose(weight, (2, 1, 0))
    b2 = bias.reshape(1, C_out)

    # TODO(synk): for large S, add a sequence-tile grid axis (overlapping halo of 2)
    # so each block stays within scoped VMEM on v7x; unnecessary at these sizes.
    out = pl.pallas_call(
        _conv1d_relu_kernel,
        out_shape=jax.ShapeDtypeStruct((B, S, C_out), x.dtype),
        grid_spec=pltpu.PrefetchScalarGridSpec(
            num_scalar_prefetch=0,
            grid=(B,),
            in_specs=[
                pl.BlockSpec((1, S + 2, C_in), lambda b: (b, 0, 0)),   # padded x
                pl.BlockSpec((3, C_in, C_out), lambda b: (0, 0, 0)),   # conv taps
                pl.BlockSpec((1, C_out), lambda b: (0, 0)),            # bias
            ],
            out_specs=pl.BlockSpec((1, S, C_out), lambda b: (b, 0, 0)),
        ),
        compiler_params=pltpu.CompilerParams(
            dimension_semantics=("parallel",)),
    )(x_pad, w_taps, b2)
    return out


def _reference(x, weight, bias):
    """Pure-JAX reference: conv1d (cross-correlation, matches torch) + ReLU."""
    y = jax.lax.conv_general_dilated(
        x,
        jnp.transpose(weight, (2, 1, 0)),           # (K, C_in, C_out)
        window_strides=(1,),
        padding=((1, 1),),
        dimension_numbers=("NWC", "WIO", "NWC"),
        precision=jax.lax.Precision.HIGHEST)
    return jax.nn.relu(y + bias)


if __name__ == "__main__":
    B, S, C_in, C_out = 2, 16, 8, 32

    key = jax.random.PRNGKey(0)
    kx, kw, kb = jax.random.split(key, 3)

    x = jax.random.normal(kx, (B, S, C_in), dtype=jnp.float32)

    # torch Conv1d default init: U(-1/sqrt(fan_in), 1/sqrt(fan_in)), fan_in = C_in * k
    bound = 1.0 / math.sqrt(C_in * 3)
    weight = jax.random.uniform(kw, (C_out, C_in, 3), jnp.float32, -bound, bound)
    bias = jax.random.uniform(kb, (C_out,), jnp.float32, -bound, bound)

    out = cnn_layer_forward(x, weight, bias)
    out = jax.block_until_ready(out)

    ref = _reference(x, weight, bias)
    assert out.shape == (B, S, C_out)
    assert jnp.allclose(out, ref, atol=1e-4, rtol=1e-4), "mismatch vs reference"

    print("KERNEL_OK")
</pallas_src>

<mosaic_0001>
module attributes {stable_mosaic.version = 11 : i64} {
  func.func @_conv1d_relu_kernel(%arg0: i32, %arg1: memref<1x18x8xf32, #tpu.memory_space<vmem>>, %arg2: memref<3x8x32xf32, #tpu.memory_space<vmem>>, %arg3: memref<1x32xf32, #tpu.memory_space<vmem>>, %arg4: memref<1x16x32xf32, #tpu.memory_space<vmem>>) attributes {dimension_semantics = [#tpu.dimension_semantics<parallel>], iteration_bounds = array<i64: 2>, scalar_prefetch = 0 : i64, scratch_operands = 0 : i64, tpu.core_type = #tpu.core_type<tc>, window_params = [{transform_indices = @transform_0, window_bounds = array<i64: 1, 18, 8>}, {pipeline_mode = #tpu.pipeline_mode<synchronous>, transform_indices = @transform_1, window_bounds = array<i64: 3, 8, 32>}, {pipeline_mode = #tpu.pipeline_mode<synchronous>, transform_indices = @transform_2, window_bounds = array<i64: 1, 32>}, {transform_indices = @transform_3, window_bounds = array<i64: 1, 16, 32>}]} {
    %c0 = arith.constant 0 : index
    %c0_0 = arith.constant 0 : index
    %c0_1 = arith.constant 0 : index
    %0 = vector.load %arg1[%c0, %c0_0, %c0_1] : memref<1x18x8xf32, #tpu.memory_space<vmem>>, vector<1x18x8xf32>
    %1 = vector.shape_cast %0 : vector<1x18x8xf32> to vector<18x8xf32>
    %2 = vector.extract_strided_slice %1 {offsets = [0, 0], sizes = [16, 8], strides = [1, 1]} : vector<18x8xf32> to vector<16x8xf32>
    %c0_2 = arith.constant 0 : index
    %c0_3 = arith.constant 0 : index
    %c0_4 = arith.constant 0 : index
    %3 = vector.load %arg2[%c0_2, %c0_3, %c0_4] : memref<3x8x32xf32, #tpu.memory_space<vmem>>, vector<1x8x32xf32>
    %4 = vector.shape_cast %3 : vector<1x8x32xf32> to vector<8x32xf32>
    %cst = arith.constant dense<0.000000e+00> : vector<16x32xf32>
    %5 = tpu.matmul %2, %4, %cst {dimension_numbers = #tpu.dot_dimension_numbers<[1], [0], [0], [1], [0, 0, 1, 1], [], []>} : vector<16x8xf32>, vector<8x32xf32>, vector<16x32xf32> -> vector<16x32xf32>
    %6 = vector.extract_strided_slice %1 {offsets = [1, 0], sizes = [16, 8], strides = [1, 1]} : vector<18x8xf32> to vector<16x8xf32>
    %c1 = arith.constant 1 : index
    %c0_5 = arith.constant 0 : index
    %c0_6 = arith.constant 0 : index
    %7 = vector.load %arg2[%c1, %c0_5, %c0_6] : memref<3x8x32xf32, #tpu.memory_space<vmem>>, vector<1x8x32xf32>
    %8 = vector.shape_cast %7 : vector<1x8x32xf32> to vector<8x32xf32>
    %cst_7 = arith.constant dense<0.000000e+00> : vector<16x32xf32>
    %9 = tpu.matmul %6, %8, %cst_7 {dimension_numbers = #tpu.dot_dimension_numbers<[1], [0], [0], [1], [0, 0, 1, 1], [], []>} : vector<16x8xf32>, vector<8x32xf32>, vector<16x32xf32> -> vector<16x32xf32>
    %10 = arith.addf %5, %9 : vector<16x32xf32>
    %11 = vector.extract_strided_slice %1 {offsets = [2, 0], sizes = [16, 8], strides = [1, 1]} : vector<18x8xf32> to vector<16x8xf32>
    %c2 = arith.constant 2 : index
    %c0_8 = arith.constant 0 : index
    %c0_9 = arith.constant 0 : index
    %12 = vector.load %arg2[%c2, %c0_8, %c0_9] : memref<3x8x32xf32, #tpu.memory_space<vmem>>, vector<1x8x32xf32>
    %13 = vector.shape_cast %12 : vector<1x8x32xf32> to vector<8x32xf32>
    %cst_10 = arith.constant dense<0.000000e+00> : vector<16x32xf32>
    %14 = tpu.matmul %11, %13, %cst_10 {dimension_numbers = #tpu.dot_dimension_numbers<[1], [0], [0], [1], [0, 0, 1, 1], [], []>} : vector<16x8xf32>, vector<8x32xf32>, vector<16x32xf32> -> vector<16x32xf32>
    %15 = arith.addf %10, %14 : vector<16x32xf32>
    %c0_11 = arith.constant 0 : index
    %c0_12 = arith.constant 0 : index
    %16 = vector.load %arg3[%c0_11, %c0_12] : memref<1x32xf32, #tpu.memory_space<vmem>>, vector<1x32xf32>
    %17 = vector.broadcast %16 : vector<1x32xf32> to vector<16x32xf32>
    %18 = arith.addf %15, %17 : vector<16x32xf32>
    %cst_13 = arith.constant 0.000000e+00 : f32
    %19 = vector.broadcast %cst_13 : f32 to vector<16x32xf32>
    %20 = arith.maximumf %18, %19 : vector<16x32xf32>
    %c0_14 = arith.constant 0 : index
    %c0_15 = arith.constant 0 : index
    %c0_16 = arith.constant 0 : index
    %21 = vector.load %arg4[%c0_14, %c0_15, %c0_16] : memref<1x16x32xf32, #tpu.memory_space<vmem>>, vector<1x16x32xf32>
    %22 = vector.shape_cast %21 : vector<1x16x32xf32> to vector<16x32xf32>
    %23 = vector.shape_cast %20 : vector<16x32xf32> to vector<1x16x32xf32>
    tpu.vector_store %arg4[%c0_14, %c0_15, %c0_16], %23 {strides = array<i32>} : memref<1x16x32xf32, #tpu.memory_space<vmem>>, vector<1x16x32xf32>,
    return
  }
  func.func @transform_0(%arg0: i32) -> (i32, i32, i32) {
    %c0_i32 = arith.constant 0 : i32
    %c0_i32_0 = arith.constant 0 : i32
    %c0_i32_1 = arith.constant 0 : i32
    return %arg0, %c0_i32, %c0_i32_0 : i32, i32, i32
  }
  func.func @transform_1(%arg0: i32) -> (i32, i32, i32) {
    %c0_i32 = arith.constant 0 : i32
    %c0_i32_0 = arith.constant 0 : i32
    %c0_i32_1 = arith.constant 0 : i32
    %c0_i32_2 = arith.constant 0 : i32
    return %c0_i32, %c0_i32_0, %c0_i32_1 : i32, i32, i32
  }
  func.func @transform_2(%arg0: i32) -> (i32, i32) {
    %c0_i32 = arith.constant 0 : i32
    %c0_i32_0 = arith.constant 0 : i32
    %c0_i32_1 = arith.constant 0 : i32
    return %c0_i32, %c0_i32_0 : i32, i32
  }
  func.func @transform_3(%arg0: i32) -> (i32, i32, i32) {
    %c0_i32 = arith.constant 0 : i32
    %c0_i32_0 = arith.constant 0 : i32
    %c0_i32_1 = arith.constant 0 : i32
    return %arg0, %c0_i32, %c0_i32_0 : i32, i32, i32
  }
}

</mosaic_0001>

<bundles_post_ra>
// kernel: tpu_custom_call.1
= control target key start
LH: loop header
LB: loop body
LE: loop exit
PB: predicated region body
PF: predicated region fallthrough
CT: control target
= control target key end

     0   :  { %8 = vsyncpa [#allocation3], 0  ;;  %s814_s0 = inlined_call_operand.vmem [shape: f32[2,18,8], index: 0, kind: input, shape index: {}]   ;;  %s815_s1 = inlined_call_operand.vmem [shape: f32[3,8,32], index: 1, kind: input, shape index: {}]   ;;  %s816_s2 = inlined_call_operand.vmem [shape: f32[1,32], index: 2, kind: input, shape index: {}]   ;;  %s817_s3 = inlined_call_operand.hbm [shape: f32[2,16,32], index: 3, kind: output, shape index: {}]  }
   0x1   :  { %10 = vsyncpa [#allocation3 + $0x1], 0  ;;  %s694_s12 = smov 0   ;;  %s696_s13 = smov 0  }
   0x2   :  { %s698_s14 = smov 0   ;;  %s700_s15 = smov 0  }
   0x3 LB: > { %s715_s16 = sadd.s32 4294967295, %s669_s15   ;;  %s522_s17 = sadd.s32 4294967294, %s669_s15   ;;  %s669_s15 = sphi %s700_s15, %s823_s15   ;;  %s665_s14 = sphi %s698_s14, %s822_s14   ;;  %s661_s13 = sphi %s696_s13, %s821_s13   ;;  %s657_s12 = sphi %s694_s12, %s820_s12  }
   0x4   : > { %s719_s18 = sadd.s32 1, %s669_s15   ;;  %s91_s19 = sadd.s32 1, %s665_s14 }
   0x5   : > { %s88_s20 = ssub.s32 %s669_s15, %s719_s18  ;;  %p101_p0 = scmp.ne.s32.totalorder %s665_s14, %s661_s13 }
   0x6   : > { %p89_p1 = scmp.eq.s32.totalorder %s88_s20, 0  ;;  %p102_p2 = scmp.eq.s32.totalorder %s715_s16, 1 }
   0x7   : > { %p107_p3 = scmp.ne.s32.totalorder %s661_s13, %s657_s12  ;;  %p108_p4 = scmp.eq.s32.totalorder %s522_s17, 1 }
   0x8   : > { %s730_s21 = scalar_select %p89_p1, %s665_s14, %s91_s19  }
   0x9   : > { %p732_p5 = por %p102_p2, %p101_p0  ;;  %p736_p6 = por %p108_p4, %p107_p3 }
   0xa   : > { %p525_p7 = scmp.ge.s32.totalorder %s669_s15, 1  ;;  %p140_p8 = scmp.lt.s32.totalorder %s669_s15, 3 }
   0xc   : > { %p141_p9 = pnand %p525_p7, %p140_p8 }
   0xd   : > { %p164_p10 = scmp.lt.s32.totalorder (!%p141_p9), %s715_s16, 1  ;;  %s161_s8 = sand.u32 (!%p141_p9), 1, %s661_s13  }
   0xe   : > { %144 = sbr.rel (%p141_p9) target bundleno = 248 (0xf8), region = 32  ;;  %s526_s9 = sshll.u32 (!%p141_p9), %s161_s8, 4 }
   0xf   : > { %s542_s17 = sshll.u32 (!%p141_p9), %s715_s16, 8  ;;  %s163_s19 = scalar_lea.vmem (!%p141_p9), [#allocation2], %s526_s9 }
  0x10   : > { %s460_s20 = sshll.u32 (!%p141_p9), %s163_s19, 4  ;;  %s770_s26 = scalar_lea.hbm (!%p141_p9), %s817_s3, %s542_s17  ;;  %s772_s20 = int_to_ptr.vmem [resolvable:$true] %s460_s20 }
  0x11   : > { %s774_s27 = scalar_lea.sflag (!%p141_p9), [#allocation3], %s161_s8  ;;  %s671_s28 = smov (!%p141_p9), [#allocation2]  }
  0x12   : > { %s613_s29 = sshll.u32 (!%p141_p9), %s671_s28, 4  ;;  %s614_s29 = int_to_ptr.vmem [resolvable:$false] %s613_s29 }
  0x13   : > { %v528_v0 = vld [vmem:[%s815_s1 + $0x8] sm:$0xff]  ;;  %v172_v1 = vld [vmem:[%s815_s1] sm:$0xff]  ;;  %v533_v2 = vld [vmem:[%s815_s1 + $0x10] sm:$0xff]  ;;  %s165_s30 = scalar_select %p164_p10, %s715_s16, 1  ;;  %vm184_vm0 = vcmask 64512   ;;  %vm178_vm1 = vcmask 1046528  }
  0x14   : > { %552 = vmatprep.subr.mxu0 %v528_v0  ;;  %557 = vmatprep.subr.mxu1 %v172_v1  ;;  %vm345_vm2 = vcmask 1045504   ;;  %v536_v22 = vld [vmem:[%s816_s2] ss:$0 sm:$0xff]  ;;  %vm443_vm3 = vcmask 261120   ;;  %s609_s16 = scalar_lea.vmem %s772_s20, 256  ;;  %p616_p0 = scmp.lt.s32.totalorder %s772_s20, %s614_s29 }
  0x15   : > { %553 = vmatpush3.msra.mxu0 %v528_v0  ;;  %558 = vmatpush3.msra.mxu1 %v172_v1  ;;  %s567_s4 = smul.u32 24, %s165_s30  ;;  %p610_p11 = scmp.ne.s32.totalorder %s772_s20, %s609_s16 }
  0x16   : > { %562 = vmatprep.subr.mxu0 %v533_v2  ;;  %s615_s30 = scalar_lea.vmem %s614_s29, 512 }
  0x17   : > { %s168_s7 = scalar_lea.vmem %s814_s0, %s567_s4  ;;  %p611_p12 = pnand %p610_p11, %p732_p5 }
  0x18   : > { %v169_v3 = vld [vmem:[%s168_s7] sm:$0xff]  ;;  %v170_v4 = vld [vmem:[%s168_s7 + $0x8] sm:$0xff]  ;;  %v171_v5 = vld [vmem:[%s168_s7 + $0x10] sm:$0x3]  ;;  %p617_p1 = scmp.lt.s32.totalorder %s615_s30, %s609_s16 }
  0x19   : > { %v179_v6 = vrot.slane %v169_v3, 1  ;;  %v180_v7 = vrot.slane %v170_v4, 1  ;;  %559 = vmatprep.mubr.msk.f32.mxu1 %vm184_vm0, %v169_v3  ;;  %v182_v8 = vrot.slane %v171_v5, 1  ;;  %v349_v9 = vrot.slane %v171_v5, 2  ;;  %p612_p13 = pneg %p611_p12 }
  0x1a   : > { %560 = vmatmul.mubr.msk.f32.vlgmr.msra.gmra.mxu1 %vm184_vm0, %v170_v4  ;;  %v346_v10 = vrot.slane %v169_v3, 2  ;;  %v347_v11 = vrot.slane %v170_v4, 2  ;;  %p618_p2 = por %p617_p1, %p616_p0 }
  0x1b   : > { %v181_v12 = vsel %vm178_vm1, %v179_v6, %v180_v7  ;;  %v183_v13 = vsel %vm178_vm1, %v180_v7, %v182_v8 }
  0x1c   : > { %554 = vmatprep.mubr.msk.f32.mxu0 %vm184_vm0, %v181_v12  ;;  %v348_v14 = vsel %vm345_vm2, %v346_v10, %v347_v11  ;;  %v350_v15 = vsel %vm345_vm2, %v347_v11, %v349_v9  ;;  %p619_p3 = pnand %p618_p2, %p612_p13 }
  0x1d   : > { %555 = vmatmul.mubr.msk.f32.vlgmr.msra.gmra.mxu0 %vm184_vm0, %v183_v13 }
  0x1e   : > { %563 = vmatpush3.msra.mxu0 %v533_v2  ;;  %564 = vmatprep.mubr.msk.f32.mxu0 %vm184_vm0, %v348_v14 }
  0x21   : > { %565 = vmatmul.mubr.msk.f32.vlgmr.msra.gmra.mxu0 %vm184_vm0, %v350_v15 }
  0xda   : > { %v561_v16 = vpop.f32.mrf.mxu1 }
  0xdc   : > { %v334_v19 = vpop.f32.mrf.mxu1 }
  0xdd   : > { %v556_v17 = vpop.f32.mrf.mxu0 }
  0xde   : > { %v340_v20 = vadd.f32 %v561_v16, %v556_v17 }
  0xdf   : > { %v255_v18 = vpop.f32.mrf.mxu0 }
  0xe0   : > { %v335_v23 = vadd.f32 %v334_v19, %v255_v18 }
  0xe1   : > { %v566_v21 = vpop.f32.mrf.mxu0 }
  0xe2   : > { %v431_v24 = vadd.f32 %v566_v21, %v340_v20 }
  0xe3   : > { %v421_v25 = vpop.f32.mrf.mxu0 }
  0xe4   : > { %v440_v26 = vadd.f32 %v536_v22, %v431_v24  ;;  %v430_v27 = vadd.f32 %v421_v25, %v335_v23 }
  0xe6   : > { %v442_v28 = vmax.f32 %v440_v26, 0.0  ;;  %v439_v29 = vadd.f32 %v536_v22, %v430_v27 }
  0xe8   : > { %445 = vst.msk [vmem:[%s163_s19 + $0x8] sm:$0xff] %vm443_vm3, %v442_v28  ;;  %v441_v30 = vmax.f32 %v439_v29, 0.0 }
  0xea   : > { %444 = vst.msk [vmem:[%s163_s19] sm:$0xff] %vm443_vm3, %v441_v30 }
  0xeb   : > { %622 = shalt.err (!%p619_p3)
}
  0xec   : > { %s623_s4 = scalar_lea.hbm %s770_s26, 256  ;;  %s627_s7 = scalar_lea.hbm %s817_s3, 512 }
  0xed   : > { %p624_p4 = scmp.ne.s32.totalorder %s770_s26, %s623_s4  ;;  %p628_p9 = scmp.lt.s32.totalorder %s770_s26, %s817_s3 }
  0xee   : > { %p629_p10 = scmp.lt.s32.totalorder %s627_s7, %s623_s4 }
  0xef   : > { %p625_p7 = pnand %p624_p4, %p732_p5 }
  0xf0   : > { %p630_p11 = por %p629_p10, %p628_p9 }
  0xf1   : > { %p626_p8 = pneg %p625_p7 }
  0xf3   : > { %p631_p12 = pnand %p630_p11, %p626_p8 }
  0xf5   : > { %634 = shalt.err (!%p631_p12)
}
  0xf6   : > { %s672_s10 = smov 128   ;;  %s673_s11 = smov 8  }
  0xf7   : > { %568 = dma.vmem_to_hbm [thread:$0]  (%p732_p5), %s772_s20, 256, %s770_s26, %s774_s27, %s672_s10, %s672_s10, %s673_s11  }
  0xf8 PF: > { %p574_p13 = scmp.ge.s32.totalorder %s669_s15, 2  ;;  %s475_s17 = sand.u32 1, %s657_s12  }
  0xf9   : > { %s476_s19 = scalar_lea.sflag [#allocation3], %s475_s17 }
  0xfa   : > { %p571_p0 = pnand %p574_p13, %p736_p6 }
  0xfc   : > { %p572_p1 = pneg %p571_p0 }
  0xfe   : > { %652 = dma.done.wait (%p572_p1), %s476_s19, 256  }
  0xff   : > { %654 = vsyncadd (%p572_p1), %s476_s19, 4294967040  ;;  %p13_p2 = scmp.ge.s32.totalorder %s719_s18, 4   ;;  %s820_s12 = smov %s661_s13 }
 0x100   : > { %s821_s13 = smov %s665_s14  ;;  %s822_s14 = smov %s730_s21 }
 0x101   : > { %s823_s15 = smov %s719_s18  ;;  %15 = sbr.rel (!%p13_p2) target bundleno = 3 (0x3), region = 69 }
 0x106   :  { %481 = vsyncpa [#allocation3], 1 }
 0x107   :  { %483 = vsyncpa [#allocation3 + $0x1], 1 }

</bundles_post_ra>
